<compile_context>
chip_gen: v5e
topology: v5e:2x2
jax: 0.10.0
libtpu: 0.0.40
codegen_flags: <defaults>
</compile_context>

<pallas_src>
import jax
import jax.numpy as jnp
from jax.experimental import pallas as pl
from jax.experimental.pallas import tpu as pltpu


_LANE = 128
_SUBLANE = 8

# Per-grid-step VMEM working-set target and scoped limit.  The working set is
# sized for the smallest per-TC VMEM of any generation (v7x: 64 MiB physical,
# ~32 MiB default scoped), leaving headroom for compiler scratch; the limit is
# raised above v5e's 16 MiB / v6e's 32 MiB defaults so the larger tiles compile.
_VMEM_WORKING_SET = 24 * 1024 * 1024
_VMEM_LIMIT_BYTES = 40 * 1024 * 1024
_FIXED_VMEM_MARGIN = 2 * 1024 * 1024   # resident weights/biases + misc scratch


def _round_up(x, m):
    return ((x + m - 1) // m) * m


def _mlp_kernel(x_ref, w1_ref, b1_ref, w2_ref, b2_ref, o_ref):
    # x_ref:  (tile_rows, in_w)   streamed per grid step (double-buffered)
    # w1_ref: (in_w, hid_w)       resident across grid steps (constant index_map)
    # b1_ref: (1, hid_w)          resident
    # w2_ref: (hid_w, out_w)      resident
    # b2_ref: (1, 1)              SMEM scalar
    # o_ref:  (tile_rows, out_w)
    h = jnp.dot(x_ref[...], w1_ref[...], preferred_element_type=jnp.float32)
    h = jnp.maximum(h + b1_ref[...], 0.0)                       # bias + ReLU (VPU)
    out = jnp.dot(h, w2_ref[...], preferred_element_type=jnp.float32)
    o_ref[...] = out + b2_ref[0, 0]


def _pick_tile_rows(n_rows, in_w, hid_w, out_w):
    """Largest row-tile whose lane-padded VMEM footprint fits the budget."""
    per_row_bytes = 4 * (2 * _round_up(in_w, _LANE)      # x block, double-buffered
                         + _round_up(hid_w, _LANE)        # hidden activation temp
                         + 2 * _round_up(out_w, _LANE))   # output block, double-buffered
    tile = (_VMEM_WORKING_SET - _FIXED_VMEM_MARGIN) // per_row_bytes
    tile = max(_SUBLANE, (tile // _SUBLANE) * _SUBLANE)
    # Keep >= 2 grid steps for moderate/large batches so the "parallel" grid
    # axis can feed both TensorCores on v7x (no-op on single-TC v5e/v6e).
    half = max(_SUBLANE, _round_up((n_rows + 1) // 2, _SUBLANE))
    return min(tile, half)


def mlp_regressor_forward(x, w1, b1, w2, b2):
    """relu(x @ w1 + b1) @ w2 + b2, flattened to (N,).  Computed in float32."""
    x = jnp.asarray(x, jnp.float32)
    n, f = x.shape
    hidden = w1.shape[1]

    w1 = jnp.asarray(w1, jnp.float32)
    b1 = jnp.asarray(b1, jnp.float32).reshape(1, hidden)
    w2 = jnp.asarray(w2, jnp.float32).reshape(hidden, 1)
    b2 = jnp.asarray(b2, jnp.float32).reshape(1, 1)

    # Small-F row packing: fold k = 128 // F samples into one lane-dense row
    # (zero-copy contiguous reshape) and use block-diagonal weights, so the
    # streamed x block carries no 128/F lane padding in VMEM.
    k = _LANE // f if (f <= _LANE and _LANE % f == 0) else 1
    if k > 1 and n % k == 0:
        eye = jnp.eye(k, dtype=jnp.float32)
        x_in = x.reshape(n // k, k * f)         # free reshape of contiguous x
        w1_in = jnp.kron(eye, w1)               # (k*F, k*H) block-diagonal
        b1_in = jnp.tile(b1, (1, k))            # (1, k*H)
        w2_in = jnp.kron(eye, w2)               # (k*H, k)  block-diagonal
    else:
        k = 1
        x_in, w1_in, b1_in, w2_in = x, w1, b1, w2

    n_rows, in_w = x_in.shape
    hid_w = k * hidden
    out_w = k

    tile_rows = _pick_tile_rows(n_rows, in_w, hid_w, out_w)
    grid = (n_rows + tile_rows - 1) // tile_rows   # ragged tail -> partial last block

    out = pl.pallas_call(
        _mlp_kernel,
        out_shape=jax.ShapeDtypeStruct((grid * tile_rows, out_w), jnp.float32),
        grid=(grid,),
        in_specs=[
            pl.BlockSpec((tile_rows, in_w), lambda i: (i, 0)),    # x: streamed tiles
            pl.BlockSpec((in_w, hid_w), lambda i: (0, 0)),        # w1: resident
            pl.BlockSpec((1, hid_w), lambda i: (0, 0)),           # b1: resident
            pl.BlockSpec((hid_w, out_w), lambda i: (0, 0)),       # w2: resident
            pl.BlockSpec(memory_space=pltpu.MemorySpace.SMEM),    # b2: SMEM scalar
        ],
        out_specs=pl.BlockSpec((tile_rows, out_w), lambda i: (i, 0)),
        compiler_params=pltpu.CompilerParams(
            dimension_semantics=("parallel",),
            vmem_limit_bytes=_VMEM_LIMIT_BYTES,
        ),
    )(x_in, w1_in, b1_in, w2_in, b2)

    # Rows past N come from uninitialized tail-block reads; slice them off.
    return out.reshape(-1)[:n]


def init_params(key, num_features, hidden=50):
    # PyTorch Linear default init: U(-1/sqrt(fan_in), 1/sqrt(fan_in))
    k1, k2, k3, k4 = jax.random.split(key, 4)
    bound1 = 1.0 / jnp.sqrt(jnp.float32(num_features))
    bound2 = 1.0 / jnp.sqrt(jnp.float32(hidden))
    w1 = jax.random.uniform(k1, (num_features, hidden), jnp.float32, -bound1, bound1)
    b1 = jax.random.uniform(k2, (1, hidden), jnp.float32, -bound1, bound1)
    w2 = jax.random.uniform(k3, (hidden, 1), jnp.float32, -bound2, bound2)
    b2 = jax.random.uniform(k4, (1, 1), jnp.float32, -bound2, bound2)
    return w1, b1, w2, b2


def _reference(x, w1, b1, w2, b2):
    return (jnp.maximum(x @ w1 + b1, 0.0) @ w2 + b2).reshape(-1)


if __name__ == "__main__":
    key = jax.random.PRNGKey(0)
    num_features = 16

    kx1, kx2, kx3, kp = jax.random.split(key, 4)
    w1, b1, w2, b2 = init_params(kp, num_features)

    # 1) Small batch, multiple of 8 -> packed lane-dense path, single tile.
    x1 = jax.random.normal(kx1, (8, num_features), dtype=jnp.float32)
    y1 = mlp_regressor_forward(x1, w1, b1, w2, b2)
    jax.block_until_ready(y1)
    assert y1.shape == (8,)
    assert jnp.allclose(y1, _reference(x1, w1, b1, w2, b2), atol=1e-4, rtol=1e-4)

    # 2) Ragged batch (300 % 8 != 0) -> unpacked fallback, partial last block.
    x2 = jax.random.normal(kx2, (300, num_features), dtype=jnp.float32)
    y2 = mlp_regressor_forward(x2, w1, b1, w2, b2)
    jax.block_until_ready(y2)
    assert y2.shape == (300,)
    assert jnp.allclose(y2, _reference(x2, w1, b1, w2, b2), atol=1e-4, rtol=1e-4)

    # 3) Larger multiple-of-8 batch -> packed path with >= 2 grid steps
    #    (exercises the dual-TensorCore "parallel" split on v7x).
    x3 = jax.random.normal(kx3, (2048, num_features), dtype=jnp.float32)
    y3 = mlp_regressor_forward(x3, w1, b1, w2, b2)
    jax.block_until_ready(y3)
    assert y3.shape == (2048,)
    assert jnp.allclose(y3, _reference(x3, w1, b1, w2, b2), atol=1e-4, rtol=1e-4)

    print("KERNEL_OK")
</pallas_src>

<mosaic_0001>
module attributes {stable_mosaic.version = 11 : i64} {
  func.func @_mlp_kernel(%arg0: i32, %arg1: memref<8x128xf32, #tpu.memory_space<vmem>>, %arg2: memref<128x400xf32, #tpu.memory_space<vmem>>, %arg3: memref<1x400xf32, #tpu.memory_space<vmem>>, %arg4: memref<400x8xf32, #tpu.memory_space<vmem>>, %arg5: memref<1x1xf32, #tpu.memory_space<smem>>, %arg6: memref<8x8xf32, #tpu.memory_space<vmem>>) attributes {dimension_semantics = [#tpu.dimension_semantics<parallel>], iteration_bounds = array<i64: 1>, scalar_prefetch = 0 : i64, scratch_operands = 0 : i64, tpu.core_type = #tpu.core_type<tc>, window_params = [{transform_indices = @transform_0, window_bounds = array<i64: 8, 128>}, {pipeline_mode = #tpu.pipeline_mode<synchronous>, transform_indices = @transform_1, window_bounds = array<i64: 128, 400>}, {pipeline_mode = #tpu.pipeline_mode<synchronous>, transform_indices = @transform_2, window_bounds = array<i64: 1, 400>}, {pipeline_mode = #tpu.pipeline_mode<synchronous>, transform_indices = @transform_3, window_bounds = array<i64: 400, 8>}, {transform_indices = @transform_4, window_bounds = array<i64: 1, 1>}, {transform_indices = @transform_5, window_bounds = array<i64: 8, 8>}]} {
    %c0 = arith.constant 0 : index
    %c0_0 = arith.constant 0 : index
    %0 = vector.load %arg1[%c0, %c0_0] : memref<8x128xf32, #tpu.memory_space<vmem>>, vector<8x128xf32>
    %c0_1 = arith.constant 0 : index
    %c0_2 = arith.constant 0 : index
    %1 = vector.load %arg2[%c0_1, %c0_2] : memref<128x400xf32, #tpu.memory_space<vmem>>, vector<128x400xf32>
    %cst = arith.constant dense<0.000000e+00> : vector<8x400xf32>
    %2 = tpu.matmul %0, %1, %cst {dimension_numbers = #tpu.dot_dimension_numbers<[1], [0], [0], [1], [0, 0, 1, 1], [], []>} : vector<8x128xf32>, vector<128x400xf32>, vector<8x400xf32> -> vector<8x400xf32>
    %c0_3 = arith.constant 0 : index
    %c0_4 = arith.constant 0 : index
    %3 = vector.load %arg3[%c0_3, %c0_4] : memref<1x400xf32, #tpu.memory_space<vmem>>, vector<1x400xf32>
    %4 = vector.broadcast %3 : vector<1x400xf32> to vector<8x400xf32>
    %5 = arith.addf %2, %4 : vector<8x400xf32>
    %cst_5 = arith.constant 0.000000e+00 : f32
    %6 = vector.broadcast %cst_5 : f32 to vector<8x400xf32>
    %7 = arith.maximumf %5, %6 : vector<8x400xf32>
    %c0_6 = arith.constant 0 : index
    %c0_7 = arith.constant 0 : index
    %8 = vector.load %arg4[%c0_6, %c0_7] : memref<400x8xf32, #tpu.memory_space<vmem>>, vector<400x8xf32>
    %cst_8 = arith.constant dense<0.000000e+00> : vector<8x8xf32>
    %9 = tpu.matmul %7, %8, %cst_8 {dimension_numbers = #tpu.dot_dimension_numbers<[1], [0], [0], [1], [0, 0, 1, 1], [], []>} : vector<8x400xf32>, vector<400x8xf32>, vector<8x8xf32> -> vector<8x8xf32>
    %c0_9 = arith.constant 0 : index
    %c0_10 = arith.constant 0 : index
    %10 = memref.load %arg5[%c0_9, %c0_10] : memref<1x1xf32, #tpu.memory_space<smem>>
    %11 = vector.broadcast %10 : f32 to vector<8x8xf32>
    %12 = arith.addf %9, %11 : vector<8x8xf32>
    %c0_11 = arith.constant 0 : index
    %c0_12 = arith.constant 0 : index
    %13 = vector.load %arg6[%c0_11, %c0_12] : memref<8x8xf32, #tpu.memory_space<vmem>>, vector<8x8xf32>
    tpu.vector_store %arg6[%c0_11, %c0_12], %12 {strides = array<i32>} : memref<8x8xf32, #tpu.memory_space<vmem>>, vector<8x8xf32>,
    return
  }
  func.func @transform_0(%arg0: i32) -> (i32, i32) {
    %c0_i32 = arith.constant 0 : i32
    %c0_i32_0 = arith.constant 0 : i32
    return %arg0, %c0_i32 : i32, i32
  }
  func.func @transform_1(%arg0: i32) -> (i32, i32) {
    %c0_i32 = arith.constant 0 : i32
    %c0_i32_0 = arith.constant 0 : i32
    %c0_i32_1 = arith.constant 0 : i32
    return %c0_i32, %c0_i32_0 : i32, i32
  }
  func.func @transform_2(%arg0: i32) -> (i32, i32) {
    %c0_i32 = arith.constant 0 : i32
    %c0_i32_0 = arith.constant 0 : i32
    %c0_i32_1 = arith.constant 0 : i32
    return %c0_i32, %c0_i32_0 : i32, i32
  }
  func.func @transform_3(%arg0: i32) -> (i32, i32) {
    %c0_i32 = arith.constant 0 : i32
    %c0_i32_0 = arith.constant 0 : i32
    %c0_i32_1 = arith.constant 0 : i32
    return %c0_i32, %c0_i32_0 : i32, i32
  }
  func.func @transform_4(%arg0: i32) -> (i32, i32) {
    %c0_i32 = arith.constant 0 : i32
    %c0_i32_0 = arith.constant 0 : i32
    %c0_i32_1 = arith.constant 0 : i32
    return %c0_i32, %c0_i32_0 : i32, i32
  }
  func.func @transform_5(%arg0: i32) -> (i32, i32) {
    %c0_i32 = arith.constant 0 : i32
    %c0_i32_0 = arith.constant 0 : i32
    return %arg0, %c0_i32 : i32, i32
  }
}

</mosaic_0001>

<bundles_post_ra>
// kernel: tpu_custom_call.1
= control target key start
LH: loop header
LB: loop body
LE: loop exit
PB: predicated region body
PF: predicated region fallthrough
CT: control target
= control target key end

     0   :  { %s748_s0 = inlined_call_operand.vmem [shape: f32[1,128], index: 0, kind: input, shape index: {}]   ;;  %s749_s1 = inlined_call_operand.vmem [shape: f32[128,400], index: 1, kind: input, shape index: {}]   ;;  %s750_s2 = inlined_call_operand.vmem [shape: f32[1,400], index: 2, kind: input, shape index: {}]   ;;  %s751_s3 = inlined_call_operand.vmem [shape: f32[400,8], index: 3, kind: input, shape index: {}]   ;;  %s752_s4 = inlined_call_operand.<no memory space> [shape: f32[1,1], index: 4, kind: input, shape index: {}]   ;;  %s753_s5 = inlined_call_operand.hbm [shape: f32[8,8], index: 5, kind: output, shape index: {}]  }
   0x1   :  { %v85_v0 = vld [vmem:[%s749_s1 + $0x1f0] sm:$0xff]  ;;  %v86_v2 = vld [vmem:[%s749_s1 + $0x1f8] sm:$0xff]  ;;  %v83_v6 = vld [vmem:[%s749_s1 + $0x1e0] sm:$0xff] }
   0x2   :  { %v81_v1 = vld [vmem:[%s749_s1 + $0x1d0] sm:$0xff]  ;;  %137 = vmatpush.msra.mxu2 %v85_v0  ;;  %157 = vmatpush.msra.mxu3 %v86_v2  ;;  %v82_v3 = vld [vmem:[%s749_s1 + $0x1d8] sm:$0xff]  ;;  %v79_v7 = vld [vmem:[%s749_s1 + $0x1c0] sm:$0xff] }
   0x3   :  { %v77_v4 = vld [vmem:[%s749_s1 + $0x1b0] sm:$0xff]  ;;  %v78_v5 = vld [vmem:[%s749_s1 + $0x1b8] sm:$0xff]  ;;  %v84_v8 = vld [vmem:[%s749_s1 + $0x1e8] sm:$0xff]  ;;  %97 = vmatpush.msra.mxu0 %v83_v6 }
   0x4   :  { %138 = vmatpush.msra.mxu2 %v81_v1  ;;  %158 = vmatpush.msra.mxu3 %v82_v3  ;;  %v73_v9 = vld [vmem:[%s749_s1 + $0x190] sm:$0xff]  ;;  %v74_v10 = vld [vmem:[%s749_s1 + $0x198] sm:$0xff]  ;;  %v75_v11 = vld [vmem:[%s749_s1 + $0x1a0] sm:$0xff] }
   0x5   :  { %117 = vmatpush.msra.mxu1 %v84_v8  ;;  %v80_v12 = vld [vmem:[%s749_s1 + $0x1c8] sm:$0xff]  ;;  %v69_v13 = vld [vmem:[%s749_s1 + $0x170] sm:$0xff]  ;;  %98 = vmatpush.msra.mxu0 %v79_v7  ;;  %v70_v14 = vld [vmem:[%s749_s1 + $0x178] sm:$0xff] }
   0x6   :  { %139 = vmatpush.msra.mxu2 %v77_v4  ;;  %159 = vmatpush.msra.mxu3 %v78_v5  ;;  %v76_v15 = vld [vmem:[%s749_s1 + $0x1a8] sm:$0xff]  ;;  %v71_v16 = vld [vmem:[%s749_s1 + $0x180] sm:$0xff]  ;;  %v65_v18 = vld [vmem:[%s749_s1 + $0x150] sm:$0xff] }
   0x7   :  { %118 = vmatpush.msra.mxu1 %v80_v12  ;;  %v72_v17 = vld [vmem:[%s749_s1 + $0x188] sm:$0xff]  ;;  %99 = vmatpush.msra.mxu0 %v75_v11  ;;  %v66_v19 = vld [vmem:[%s749_s1 + $0x158] sm:$0xff]  ;;  %v67_v20 = vld [vmem:[%s749_s1 + $0x160] sm:$0xff] }
   0x8   :  { %140 = vmatpush.msra.mxu2 %v73_v9  ;;  %160 = vmatpush.msra.mxu3 %v74_v10  ;;  %v68_v21 = vld [vmem:[%s749_s1 + $0x168] sm:$0xff]  ;;  %v61_v22 = vld [vmem:[%s749_s1 + $0x130] sm:$0xff]  ;;  %v62_v23 = vld [vmem:[%s749_s1 + $0x138] sm:$0xff] }
   0x9   :  { %119 = vmatpush.msra.mxu1 %v76_v15  ;;  %100 = vmatpush.msra.mxu0 %v71_v16  ;;  %v63_v24 = vld [vmem:[%s749_s1 + $0x140] sm:$0xff]  ;;  %v64_v25 = vld [vmem:[%s749_s1 + $0x148] sm:$0xff]  ;;  %v57_v26 = vld [vmem:[%s749_s1 + $0x110] sm:$0xff] }
   0xa   :  { %141 = vmatpush.msra.mxu2 %v69_v13  ;;  %161 = vmatpush.msra.mxu3 %v70_v14  ;;  %v58_v27 = vld [vmem:[%s749_s1 + $0x118] sm:$0xff]  ;;  %v59_v28 = vld [vmem:[%s749_s1 + $0x120] sm:$0xff]  ;;  %v60_v29 = vld [vmem:[%s749_s1 + $0x128] sm:$0xff] }
   0xb   :  { %120 = vmatpush.msra.mxu1 %v72_v17  ;;  %101 = vmatpush.msra.mxu0 %v67_v20  ;;  %v53_v30 = vld [vmem:[%s749_s1 + $0xf0] sm:$0xff]  ;;  %v54_v31 = vld [vmem:[%s749_s1 + $0xf8] sm:$0xff]  ;;  %v55_v32 = vld [vmem:[%s749_s1 + $0x100] sm:$0xff] }
   0xc   :  { %142 = vmatpush.msra.mxu2 %v65_v18  ;;  %162 = vmatpush.msra.mxu3 %v66_v19  ;;  %v56_v33 = vld [vmem:[%s749_s1 + $0x108] sm:$0xff]  ;;  %v49_v34 = vld [vmem:[%s749_s1 + $0xd0] sm:$0xff]  ;;  %v50_v35 = vld [vmem:[%s749_s1 + $0xd8] sm:$0xff] }
   0xd   :  { %121 = vmatpush.msra.mxu1 %v68_v21  ;;  %102 = vmatpush.msra.mxu0 %v63_v24  ;;  %v51_v36 = vld [vmem:[%s749_s1 + $0xe0] sm:$0xff]  ;;  %v52_v37 = vld [vmem:[%s749_s1 + $0xe8] sm:$0xff]  ;;  %v45_v38 = vld [vmem:[%s749_s1 + $0xb0] sm:$0xff] }
   0xe   :  { %143 = vmatpush.msra.mxu2 %v61_v22  ;;  %163 = vmatpush.msra.mxu3 %v62_v23  ;;  %v46_v39 = vld [vmem:[%s749_s1 + $0xb8] sm:$0xff]  ;;  %v47_v40 = vld [vmem:[%s749_s1 + $0xc0] sm:$0xff]  ;;  %v48_v41 = vld [vmem:[%s749_s1 + $0xc8] sm:$0xff] }
   0xf   :  { %122 = vmatpush.msra.mxu1 %v64_v25  ;;  %103 = vmatpush.msra.mxu0 %v59_v28  ;;  %v41_v42 = vld [vmem:[%s749_s1 + $0x90] sm:$0xff]  ;;  %v42_v43 = vld [vmem:[%s749_s1 + $0x98] sm:$0xff]  ;;  %v43_v44 = vld [vmem:[%s749_s1 + $0xa0] sm:$0xff] }
  0x10   :  { %144 = vmatpush.msra.mxu2 %v57_v26  ;;  %164 = vmatpush.msra.mxu3 %v58_v27  ;;  %v44_v45 = vld [vmem:[%s749_s1 + $0xa8] sm:$0xff]  ;;  %v37_v46 = vld [vmem:[%s749_s1 + $0x70] sm:$0xff]  ;;  %v38_v47 = vld [vmem:[%s749_s1 + $0x78] sm:$0xff] }
  0x11   :  { %123 = vmatpush.msra.mxu1 %v60_v29  ;;  %104 = vmatpush.msra.mxu0 %v55_v32  ;;  %v39_v48 = vld [vmem:[%s749_s1 + $0x80] sm:$0xff]  ;;  %v40_v49 = vld [vmem:[%s749_s1 + $0x88] sm:$0xff]  ;;  %v33_v50 = vld [vmem:[%s749_s1 + $0x50] sm:$0xff] }
  0x12   :  { %145 = vmatpush.msra.mxu2 %v53_v30  ;;  %165 = vmatpush.msra.mxu3 %v54_v31  ;;  %v34_v51 = vld [vmem:[%s749_s1 + $0x58] sm:$0xff]  ;;  %v35_v52 = vld [vmem:[%s749_s1 + $0x60] sm:$0xff]  ;;  %v36_v53 = vld [vmem:[%s749_s1 + $0x68] sm:$0xff] }
  0x13   :  { %124 = vmatpush.msra.mxu1 %v56_v33  ;;  %105 = vmatpush.msra.mxu0 %v51_v36  ;;  %v29_v54 = vld [vmem:[%s749_s1 + $0x30] sm:$0xff]  ;;  %v30_v55 = vld [vmem:[%s749_s1 + $0x38] sm:$0xff]  ;;  %v31_v56 = vld [vmem:[%s749_s1 + $0x40] sm:$0xff] }
  0x14   :  { %146 = vmatpush.msra.mxu2 %v49_v34  ;;  %166 = vmatpush.msra.mxu3 %v50_v35  ;;  %v32_v57 = vld [vmem:[%s749_s1 + $0x48] sm:$0xff]  ;;  %v25_v58 = vld [vmem:[%s749_s1 + $0x10] sm:$0xff]  ;;  %v26_v59 = vld [vmem:[%s749_s1 + $0x18] sm:$0xff] }
  0x15   :  { %125 = vmatpush.msra.mxu1 %v52_v37  ;;  %106 = vmatpush.msra.mxu0 %v47_v40  ;;  %v22_v60 = vld [vmem:[%s748_s0] sm:$0xff]  ;;  %v28_v62 = vld [vmem:[%s749_s1 + $0x28] sm:$0xff]  ;;  %v228_v63 = vld [vmem:[%s751_s3 + $0x178] sm:$0xff] }
  0x16   :  { %147 = vmatpush.msra.mxu2 %v45_v38  ;;  %167 = vmatpush.msra.mxu3 %v46_v39  ;;  %v27_v61 = vld [vmem:[%s749_s1 + $0x20] sm:$0xff]  ;;  %v24_v1 = vld [vmem:[%s749_s1 + $0x8] sm:$0xff]  ;;  %v196_v3 = vld [vmem:[%s751_s3 + $0x78] sm:$0xff] }
  0x17   :  { %126 = vmatpush.msra.mxu1 %v48_v41  ;;  %107 = vmatpush.msra.mxu0 %v43_v44  ;;  %v23_v0 = vld [vmem:[%s749_s1] sm:$0xff]  ;;  %v230_v2 = vld [vmem:[%s751_s3 + $0x188] sm:$0xff]  ;;  %v227_v4 = vld [vmem:[%s751_s3 + $0x170] sm:$0xff] }
  0x18   :  { %148 = vmatpush.msra.mxu2 %v41_v42  ;;  %168 = vmatpush.msra.mxu3 %v42_v43 }
  0x19   :  { %127 = vmatpush.msra.mxu1 %v44_v45  ;;  %108 = vmatpush.msra.mxu0 %v39_v48 }
  0x1a   :  { %149 = vmatpush.msra.mxu2 %v37_v46  ;;  %169 = vmatpush.msra.mxu3 %v38_v47 }
  0x1b   :  { %128 = vmatpush.msra.mxu1 %v40_v49  ;;  %109 = vmatpush.msra.mxu0 %v35_v52 }
  0x1c   :  { %150 = vmatpush.msra.mxu2 %v33_v50  ;;  %170 = vmatpush.msra.mxu3 %v34_v51 }
  0x1d   :  { %129 = vmatpush.msra.mxu1 %v36_v53  ;;  %110 = vmatpush.msra.mxu0 %v31_v56 }
  0x1e   :  { %151 = vmatpush.msra.mxu2 %v29_v54  ;;  %171 = vmatpush.msra.mxu3 %v30_v55 }
  0x1f   :  { %130 = vmatpush.msra.mxu1 %v32_v57  ;;  %111 = vmatpush.msra.mxu0 %v27_v61 }
  0x20   :  { %152 = vmatpush.msra.mxu2 %v25_v58  ;;  %172 = vmatpush.msra.mxu3 %v26_v59 }
  0x21   :  { %153 = vmatmul.f32.vlgmr.msra.gmra.mxu2 %v22_v60  ;;  %173 = vmatmul.f32.vlgmr.msra.gmra.mxu3 %v22_v60 }
  0x22   :  { %131 = vmatpush.msra.mxu1 %v28_v62  ;;  %277 = vmatpush.msrb.mxu2 %v228_v63 }
  0x23   :  { %311 = vmatpush.msrb.mxu3 %v230_v2 }
  0x24   :  { %11 = vsyncpa [#allocation4], 0  ;;  %112 = vmatpush.msra.mxu0 %v23_v0  ;;  %132 = vmatpush.msra.mxu1 %v24_v1  ;;  %v212_v5 = vld [vmem:[%s751_s3 + $0xf8] sm:$0xff]  ;;  %v195_v6 = vld [vmem:[%s751_s3 + $0x70] sm:$0xff]  ;;  %vm233_vm0 = vcmask 130048   ;;  %s363_s17 = smov [#allocation3]  }
  0x25   :  { %113 = vmatmul.f32.vlgmr.msra.gmra.mxu0 %v22_v60  ;;  %133 = vmatmul.f32.vlgmr.msra.gmra.mxu1 %v22_v60  ;;  %v226_v7 = vld [vmem:[%s751_s3 + $0x168] sm:$0xff]  ;;  %v211_v8 = vld [vmem:[%s751_s3 + $0xf0] sm:$0xff]  ;;  %v225_v10 = vld [vmem:[%s751_s3 + $0x160] sm:$0xff]  ;;  %s324_s18 = sshll.u32 %s363_s17, 4  ;;  %s326_s21 = sshll.u32 %s753_s5, 4  ;;  %vm317_vm1 = vcmask 64512   ;;  %s325_s18 = int_to_ptr.vmem [resolvable:$true] %s324_s18  ;;  %s327_s21 = int_to_ptr.hbm [resolvable:$true] %s326_s21 }
  0x26   :  { %237 = vmatpush.msrb.mxu0 %v196_v3  ;;  %278 = vmatpush.msrb.mxu2 %v227_v4  ;;  %v194_v9 = vld [vmem:[%s751_s3 + $0x68] sm:$0xff]  ;;  %v193_v12 = vld [vmem:[%s751_s3 + $0x60] sm:$0xff]  ;;  %v224_v13 = vld [vmem:[%s751_s3 + $0x158] sm:$0xff]  ;;  %v232_v4 = vstv %s752_s4 }
  0x27   :  { %257 = vmatpush.msrb.mxu1 %v212_v5  ;;  %v210_v11 = vld [vmem:[%s751_s3 + $0xe8] sm:$0xff]  ;;  %v209_v14 = vld [vmem:[%s751_s3 + $0xe0] sm:$0xff]  ;;  %v192_v15 = vld [vmem:[%s751_s3 + $0x58] sm:$0xff] }
  0x28   :  { %238 = vmatpush.msrb.mxu0 %v195_v6  ;;  %279 = vmatpush.msrb.mxu2 %v226_v7  ;;  %v223_v16 = vld [vmem:[%s751_s3 + $0x150] sm:$0xff]  ;;  %v208_v17 = vld [vmem:[%s751_s3 + $0xd8] sm:$0xff]  ;;  %v222_v19 = vld [vmem:[%s751_s3 + $0x148] sm:$0xff] }
  0x29   :  { %258 = vmatpush.msrb.mxu1 %v211_v8  ;;  %v191_v18 = vld [vmem:[%s751_s3 + $0x50] sm:$0xff]  ;;  %v190_v21 = vld [vmem:[%s751_s3 + $0x48] sm:$0xff]  ;;  %v221_v22 = vld [vmem:[%s751_s3 + $0x140] sm:$0xff] }
  0x2a   :  { %239 = vmatpush.msrb.mxu0 %v194_v9  ;;  %280 = vmatpush.msrb.mxu2 %v225_v10  ;;  %v207_v20 = vld [vmem:[%s751_s3 + $0xd0] sm:$0xff]  ;;  %v206_v23 = vld [vmem:[%s751_s3 + $0xc8] sm:$0xff]  ;;  %v189_v24 = vld [vmem:[%s751_s3 + $0x40] sm:$0xff] }
  0x2b   :  { %259 = vmatpush.msrb.mxu1 %v210_v11  ;;  %v220_v25 = vld [vmem:[%s751_s3 + $0x138] sm:$0xff]  ;;  %v205_v26 = vld [vmem:[%s751_s3 + $0xc0] sm:$0xff]  ;;  %v219_v28 = vld [vmem:[%s751_s3 + $0x130] sm:$0xff] }
  0x2c   :  { %240 = vmatpush.msrb.mxu0 %v193_v12  ;;  %281 = vmatpush.msrb.mxu2 %v224_v13  ;;  %v188_v27 = vld [vmem:[%s751_s3 + $0x38] sm:$0xff]  ;;  %v187_v30 = vld [vmem:[%s751_s3 + $0x30] sm:$0xff]  ;;  %v218_v31 = vld [vmem:[%s751_s3 + $0x128] sm:$0xff] }
  0x2d   :  { %260 = vmatpush.msrb.mxu1 %v209_v14  ;;  %v204_v29 = vld [vmem:[%s751_s3 + $0xb8] sm:$0xff]  ;;  %v203_v32 = vld [vmem:[%s751_s3 + $0xb0] sm:$0xff]  ;;  %v186_v33 = vld [vmem:[%s751_s3 + $0x28] sm:$0xff] }
  0x2e   :  { %241 = vmatpush.msrb.mxu0 %v192_v15  ;;  %282 = vmatpush.msrb.mxu2 %v223_v16  ;;  %v217_v34 = vld [vmem:[%s751_s3 + $0x120] sm:$0xff]  ;;  %v202_v35 = vld [vmem:[%s751_s3 + $0xa8] sm:$0xff]  ;;  %v216_v37 = vld [vmem:[%s751_s3 + $0x118] sm:$0xff] }
  0x2f   :  { %261 = vmatpush.msrb.mxu1 %v208_v17  ;;  %v185_v36 = vld [vmem:[%s751_s3 + $0x20] sm:$0xff]  ;;  %v184_v38 = vld [vmem:[%s751_s3 + $0x18] sm:$0xff]  ;;  %v215_v40 = vld [vmem:[%s751_s3 + $0x110] sm:$0xff] }
  0x30   :  { %242 = vmatpush.msrb.mxu0 %v191_v18  ;;  %283 = vmatpush.msrb.mxu2 %v222_v19  ;;  %v201_v39 = vld [vmem:[%s751_s3 + $0xa0] sm:$0xff]  ;;  %v183_v41 = vld [vmem:[%s751_s3 + $0x10] sm:$0xff]  ;;  %v200_v42 = vld [vmem:[%s751_s3 + $0x98] sm:$0xff] }
  0x31   :  { %262 = vmatpush.msrb.mxu1 %v207_v20  ;;  %v214_v43 = vld [vmem:[%s751_s3 + $0x108] sm:$0xff]  ;;  %v229_v44 = vld [vmem:[%s751_s3 + $0x180] sm:$0xff]  ;;  %v199_v46 = vld [vmem:[%s751_s3 + $0x90] sm:$0xff] }
  0x32   :  { %243 = vmatpush.msrb.mxu0 %v190_v21  ;;  %284 = vmatpush.msrb.mxu2 %v221_v22  ;;  %v182_v45 = vld [vmem:[%s751_s3 + $0x8] sm:$0xff]  ;;  %v213_v47 = vld [vmem:[%s751_s3 + $0x100] sm:$0xff] }
  0x33   :  { %263 = vmatpush.msrb.mxu1 %v206_v23  ;;  %312 = vmatpush.msrb.mxu3 %v229_v44  ;;  %v181_v48 = vld [vmem:[%s751_s3] sm:$0xff]  ;;  %v198_v49 = vld [vmem:[%s751_s3 + $0x88] sm:$0xff] }
  0x34   :  { %244 = vmatpush.msrb.mxu0 %v189_v24  ;;  %285 = vmatpush.msrb.mxu2 %v220_v25  ;;  %v197_v50 = vld [vmem:[%s751_s3 + $0x80] sm:$0xff] }
  0x35   :  { %264 = vmatpush.msrb.mxu1 %v205_v26  ;;  %v87_v51 = vld [vmem:[%s750_s2] sm:$0xf] }
  0x36   :  { %245 = vmatpush.msrb.mxu0 %v188_v27  ;;  %286 = vmatpush.msrb.mxu2 %v219_v28  ;;  %v89_v52 = vperm.slane %v87_v51, 0  ;;  %v90_v53 = vperm.slane %v87_v51, 1  ;;  %v91_v54 = vperm.slane %v87_v51, 2  ;;  %v92_v55 = vperm.slane %v87_v51, 3 }
  0x37   :  { %265 = vmatpush.msrb.mxu1 %v204_v29 }
  0x38   :  { %246 = vmatpush.msrb.mxu0 %v187_v30  ;;  %287 = vmatpush.msrb.mxu2 %v218_v31 }
  0x39   :  { %266 = vmatpush.msrb.mxu1 %v203_v32 }
  0x3a   :  { %247 = vmatpush.msrb.mxu0 %v186_v33  ;;  %288 = vmatpush.msrb.mxu2 %v217_v34 }
  0x3b   :  { %267 = vmatpush.msrb.mxu1 %v202_v35 }
  0x3c   :  { %248 = vmatpush.msrb.mxu0 %v185_v36  ;;  %289 = vmatpush.msrb.mxu2 %v216_v37 }
  0x3d   :  { %268 = vmatpush.msrb.mxu1 %v201_v39 }
  0x3e   :  { %249 = vmatpush.msrb.mxu0 %v184_v38  ;;  %290 = vmatpush.msrb.mxu2 %v215_v40 }
  0x3f   :  { %269 = vmatpush.msrb.mxu1 %v200_v42 }
  0x40   :  { %250 = vmatpush.msrb.mxu0 %v183_v41  ;;  %291 = vmatpush.msrb.mxu2 %v214_v43 }
  0x41   :  { %270 = vmatpush.msrb.mxu1 %v199_v46 }
  0x42   :  { %251 = vmatpush.msrb.mxu0 %v182_v45  ;;  %292 = vmatpush.msrb.mxu2 %v213_v47 }
  0x43   :  { %271 = vmatpush.msrb.mxu1 %v198_v49 }
  0x44   :  { %252 = vmatpush.msrb.mxu0 %v181_v48 }
  0x45   :  { %272 = vmatpush.msrb.mxu1 %v197_v50 }
  0xa2   :  { %v114_v56 = vpop.f32.mrf.mxu0  ;;  %v134_v57 = vpop.f32.mrf.mxu1 }
  0xa3   :  { %v115_v58 = vadd.f32 %v114_v56, %v89_v52  ;;  %v135_v59 = vadd.f32 %v134_v57, %v90_v53 }
  0xa4   :  { %v154_v60 = vpop.f32.mrf.mxu2  ;;  %v174_v61 = vpop.f32.mrf.mxu3 }
  0xa5   :  { %v155_v62 = vadd.f32 %v154_v60, %v91_v54  ;;  %v177_v63 = vmax.f32 %v115_v58, 0.0  ;;  %v175_v0 = vadd.f32 %v174_v61, %v92_v55  ;;  %v178_v1 = vmax.f32 %v135_v59, 0.0 }
  0xa7   :  { %v179_v2 = vmax.f32 %v155_v62, 0.0  ;;  %v180_v3 = vmax.f32 %v175_v0, 0.0  ;;  %253 = vmatmul.f32.vlgmr.msrb.gmra.mxu0 %v177_v63  ;;  %273 = vmatmul.f32.vlgmr.msrb.gmra.mxu1 %v178_v1 }
  0xa9   :  { %293 = vmatmul.f32.vlgmr.msrb.gmra.mxu2 %v179_v2  ;;  %335 = vmatmul.msk.f32.vlgmr.msrb.gmra.mxu3 %vm233_vm0, %v180_v3 }
 0x124   :  { %v254_v5 = vpop.f32.mrf.mxu0  ;;  %v274_v7 = vpop.f32.mrf.mxu1 }
 0x125   :  { %v255_v6 = vadd.f32 %v254_v5, %v232_v4 }
 0x127   :  { %v275_v8 = vadd.f32 %v274_v7, %v255_v6 }
 0x12c   :  { %v294_v9 = vpop.f32.mrf.mxu2  ;;  %v314_v10 = vpop.f32.mrf.mxu3 }
 0x12d   :  { %v295_v11 = vadd.f32 %v294_v9, %v275_v8 }
 0x12f   :  { %v315_v12 = vadd.f32 %v314_v10, %v295_v11 }
 0x131   :  { %318 = vst.msk [vmem:[#allocation3] sm:$0xff] %vm317_vm1, %v315_v12 }
 0x132   :  { %329 = dma.vmem_to_hbm [thread:$0]  %s325_s18, 128, %s327_s21, [#allocation4]  }
 0x133   :  { %361 = dma.done.wait [#allocation4], 128  }
 0x134   :  { %362 = vsyncadd [#allocation4], 4294967168 }
 0x135   :  { %334 = vsyncpa [#allocation4], 1 }

</bundles_post_ra>
